<compile_context>
chip_gen: v6e
topology: v6e:2x2x1
jax: 0.10.0
libtpu: 0.0.40
codegen_flags: <defaults>
</compile_context>

<pallas_src>
import functools
import math

import jax
import jax.numpy as jnp
from jax import lax
from jax.experimental import pallas as pl
from jax.experimental.pallas import tpu as pltpu


_VMEM_LIMIT_BYTES = 48 * 1024 * 1024  # > 16/32 MiB scoped defaults, < 64 MiB (v7x)


def _round_up(n, m):
    return (n + m - 1) // m * m


def pack_qkv_weights(wq, wk, wv, dtype=None):
    """Build the fused (d_in, 3p) weight ONCE at init time (hoisted out of forward).

    Columns are zero-padded to p = round_up(d_out, 128); the softmax scale
    1/sqrt(d_out) is folded into the Q slice.  Returns (w_qkv, d_out).
    """
    d_in, d_out = wq.shape
    p = _round_up(d_out, 128)
    scale = 1.0 / math.sqrt(float(d_out))

    def _pad(w):
        return jnp.pad(w, ((0, 0), (0, p - d_out)))

    w = jnp.concatenate([_pad(wq) * scale, _pad(wk), _pad(wv)], axis=1)
    if dtype is not None:
        w = w.astype(dtype)
    return w, d_out


# ---------------------------------------------------------------------------
# Stage 1: fused QKV projection.
# ---------------------------------------------------------------------------
def _qkv_proj_kernel(x_ref, w_ref, o_ref):
    o_ref[...] = jnp.dot(
        x_ref[...], w_ref[...], preferred_element_type=jnp.float32
    ).astype(o_ref.dtype)


# ---------------------------------------------------------------------------
# Stage 2: flash attention over precomputed Q/K/V tiles (online softmax).
# ---------------------------------------------------------------------------
def _flash_kernel(q_ref, k_ref, v_ref, o_ref, m_scr, l_scr, acc_scr,
                  *, seq_len, tk, mask_keys):
    kv = pl.program_id(1)

    @pl.when(kv == 0)
    def _init():
        m_scr[...] = jnp.full_like(m_scr, -jnp.inf)
        l_scr[...] = jnp.zeros_like(l_scr)
        acc_scr[...] = jnp.zeros_like(acc_scr)

    # scores = (scale*Q) @ K^T without materializing K.T: contract last dims on MXU.
    s = lax.dot_general(
        q_ref[...], k_ref[...],
        dimension_numbers=(((1,), (1,)), ((), ())),
        preferred_element_type=jnp.float32,
    )  # (tq, tk) f32

    if mask_keys:
        # Zero-padded key rows must not receive attention weight.
        key_pos = kv * tk + lax.broadcasted_iota(jnp.int32, s.shape, 1)
        s = jnp.where(key_pos < seq_len, s, -jnp.inf)

    # Online softmax update (stats kept in f32).
    m_prev = m_scr[...]
    m_new = jnp.maximum(m_prev, jnp.max(s, axis=-1, keepdims=True))
    alpha = jnp.exp(m_prev - m_new)
    prob = jnp.exp(s - m_new)
    l_scr[...] = alpha * l_scr[...] + jnp.sum(prob, axis=-1, keepdims=True)
    acc_scr[...] = alpha * acc_scr[...] + jnp.dot(
        prob.astype(v_ref.dtype), v_ref[...], preferred_element_type=jnp.float32)
    m_scr[...] = m_new

    @pl.when(kv == pl.num_programs(1) - 1)
    def _finalize():
        inv = pl.reciprocal(l_scr[...], approx=True)  # EUP, not a VPU divide
        o_ref[...] = (acc_scr[...] * inv).astype(o_ref.dtype)


def _maybe_buffered_spec(shape, index_map, use_buffered):
    """BlockSpec with Buffered(3) on the K/V streams when supported & useful."""
    if use_buffered:
        buffered = getattr(pl, "Buffered", None)
        if buffered is not None:
            try:
                return pl.BlockSpec(shape, index_map, pipeline_mode=buffered(3))
            except TypeError:
                pass
    return pl.BlockSpec(shape, index_map)


def self_attention_v2(x, w_qkv, d_out, *, tile=256):
    """x: (S, d_in); w_qkv: packed (d_in, 3p) from pack_qkv_weights.

    Returns (S, d_out).  `tile` is the q/kv tile size (multiples of 128; 512
    pays on v5e/v6e, keep 256 on v7x to respect the 64 MiB VMEM budget).
    """
    S, d_in = x.shape
    p3 = w_qkv.shape[1]
    assert p3 % 3 == 0
    p = p3 // 3

    # Tile size: 128-aligned, no larger than needed for small S.
    t = _round_up(min(tile, _round_up(S, 128)), 128)
    s_pad = _round_up(S, t)
    mask_keys = s_pad != S

    xp = x if s_pad == S else jnp.pad(x, ((0, s_pad - S), (0, 0)))
    w = w_qkv.astype(x.dtype)  # one dtype for every MXU operand

    # ---- Stage 1: qkv = x @ [scale*Wq | Wk | Wv]  -> (s_pad, 3p), x.dtype ----
    qkv = pl.pallas_call(
        _qkv_proj_kernel,
        out_shape=jax.ShapeDtypeStruct((s_pad, p3), x.dtype),
        grid_spec=pltpu.PrefetchScalarGridSpec(
            num_scalar_prefetch=0,
            grid=(s_pad // t,),
            in_specs=[
                pl.BlockSpec((t, d_in), lambda i: (i, 0)),
                pl.BlockSpec((d_in, p3), lambda i: (0, 0)),
            ],
            out_specs=pl.BlockSpec((t, p3), lambda i: (i, 0)),
        ),
        compiler_params=pltpu.CompilerParams(
            dimension_semantics=("parallel",),
            vmem_limit_bytes=_VMEM_LIMIT_BYTES),
    )(xp, w)

    # ---- Stage 2: flash attention over the packed Q/K/V slab ----
    n_q = s_pad // t
    n_kv = s_pad // t
    use_buffered = n_kv >= 3  # only worth extra VMEM when the kv pipe is deep

    kernel = functools.partial(
        _flash_kernel, seq_len=S, tk=t, mask_keys=mask_keys)

    out_padded = pl.pallas_call(
        kernel,
        out_shape=jax.ShapeDtypeStruct((s_pad, p), x.dtype),
        grid_spec=pltpu.PrefetchScalarGridSpec(
            num_scalar_prefetch=0,
            grid=(n_q, n_kv),
            in_specs=[
                # Column block 0 / 1 / 2 of the packed (s_pad, 3p) slab = Q / K / V.
                pl.BlockSpec((t, p), lambda qi, ki: (qi, 0)),                 # Q
                _maybe_buffered_spec((t, p), lambda qi, ki: (ki, 1),
                                     use_buffered),                           # K
                _maybe_buffered_spec((t, p), lambda qi, ki: (ki, 2),
                                     use_buffered),                           # V
            ],
            out_specs=pl.BlockSpec((t, p), lambda qi, ki: (qi, 0)),
            scratch_shapes=[
                pltpu.VMEM((t, 1), jnp.float32),   # running max
                pltpu.VMEM((t, 1), jnp.float32),   # running sum
                pltpu.VMEM((t, p), jnp.float32),   # output accumulator
            ],
        ),
        compiler_params=pltpu.CompilerParams(
            dimension_semantics=("parallel", "arbitrary"),
            vmem_limit_bytes=_VMEM_LIMIT_BYTES),
    )(qkv, qkv, qkv)

    # Drop padded query rows and padded (zero) output columns.
    return out_padded[:S, :d_out]


def _reference(x, wq, wk, wv):
    q = x @ wq
    k = x @ wk
    v = x @ wv
    scores = q @ k.T / jnp.sqrt(jnp.float32(wq.shape[1]))
    w = jax.nn.softmax(scores, axis=-1)
    return w @ v


if __name__ == "__main__":
    # Small shapes consistent with the module's forward: x is (seq, d_in).
    seq, d_in, d_out = 8, 32, 32

    key = jax.random.PRNGKey(0)
    k_x, k_q, k_k, k_v = jax.random.split(key, 4)

    x = jax.random.normal(k_x, (seq, d_in), dtype=jnp.float32)

    # Deterministic init mimicking nn.Linear default (uniform +/- 1/sqrt(d_in)),
    # stored as (d_in, d_out), i.e. already transposed relative to PyTorch.
    bound = 1.0 / math.sqrt(d_in)
    wq = jax.random.uniform(k_q, (d_in, d_out), jnp.float32, -bound, bound)
    wk = jax.random.uniform(k_k, (d_in, d_out), jnp.float32, -bound, bound)
    wv = jax.random.uniform(k_v, (d_in, d_out), jnp.float32, -bound, bound)

    # Pack the fused weight ONCE (init-time), then run the forward.
    w_qkv, d_out_packed = pack_qkv_weights(wq, wk, wv, dtype=x.dtype)

    out = jax.block_until_ready(self_attention_v2(x, w_qkv, d_out_packed))
    ref = _reference(x, wq, wk, wv)

    assert out.shape == (seq, d_out)
    # approx=True reciprocal on the EUP => slightly relaxed tolerance vs f32 ref.
    assert jnp.allclose(out, ref, atol=2e-3, rtol=2e-3), "mismatch vs reference"
    print("KERNEL_OK")
</pallas_src>

<mosaic_0001>
module attributes {stable_mosaic.version = 11 : i64} {
  func.func @_qkv_proj_kernel(%arg0: i32, %arg1: memref<128x32xf32, #tpu.memory_space<vmem>>, %arg2: memref<32x384xf32, #tpu.memory_space<vmem>>, %arg3: memref<128x384xf32, #tpu.memory_space<vmem>>) attributes {dimension_semantics = [#tpu.dimension_semantics<parallel>], iteration_bounds = array<i64: 1>, scalar_prefetch = 0 : i64, scratch_operands = 0 : i64, tpu.core_type = #tpu.core_type<tc>, window_params = [{transform_indices = @transform_0, window_bounds = array<i64: 128, 32>}, {pipeline_mode = #tpu.pipeline_mode<synchronous>, transform_indices = @transform_1, window_bounds = array<i64: 32, 384>}, {transform_indices = @transform_2, window_bounds = array<i64: 128, 384>}]} {
    %c0 = arith.constant 0 : index
    %c0_0 = arith.constant 0 : index
    %0 = vector.load %arg1[%c0, %c0_0] : memref<128x32xf32, #tpu.memory_space<vmem>>, vector<128x32xf32>
    %c0_1 = arith.constant 0 : index
    %c0_2 = arith.constant 0 : index
    %1 = vector.load %arg2[%c0_1, %c0_2] : memref<32x384xf32, #tpu.memory_space<vmem>>, vector<32x384xf32>
    %cst = arith.constant dense<0.000000e+00> : vector<128x384xf32>
    %2 = tpu.matmul %0, %1, %cst {dimension_numbers = #tpu.dot_dimension_numbers<[1], [0], [0], [1], [0, 0, 1, 1], [], []>} : vector<128x32xf32>, vector<32x384xf32>, vector<128x384xf32> -> vector<128x384xf32>
    %c0_3 = arith.constant 0 : index
    %c0_4 = arith.constant 0 : index
    %3 = vector.load %arg3[%c0_3, %c0_4] : memref<128x384xf32, #tpu.memory_space<vmem>>, vector<128x384xf32>
    tpu.vector_store %arg3[%c0_3, %c0_4], %2 {strides = array<i32>} : memref<128x384xf32, #tpu.memory_space<vmem>>, vector<128x384xf32>,
    return
  }
  func.func @transform_0(%arg0: i32) -> (i32, i32) {
    %c0_i32 = arith.constant 0 : i32
    %c0_i32_0 = arith.constant 0 : i32
    return %arg0, %c0_i32 : i32, i32
  }
  func.func @transform_1(%arg0: i32) -> (i32, i32) {
    %c0_i32 = arith.constant 0 : i32
    %c0_i32_0 = arith.constant 0 : i32
    %c0_i32_1 = arith.constant 0 : i32
    return %c0_i32, %c0_i32_0 : i32, i32
  }
  func.func @transform_2(%arg0: i32) -> (i32, i32) {
    %c0_i32 = arith.constant 0 : i32
    %c0_i32_0 = arith.constant 0 : i32
    return %arg0, %c0_i32 : i32, i32
  }
}

</mosaic_0001>

<bundles_post_ra>
// kernel: tpu_custom_call.1
= control target key start
LH: loop header
LB: loop body
LE: loop exit
PB: predicated region body
PF: predicated region fallthrough
CT: control target
= control target key end

     0   :  { %vm40_vm0 = vcmask 261120   ;;  %v577_v11 = vmov 0.0   ;;  %s735_s0 = inlined_call_operand.vmem [shape: f32[128,32], index: 0, kind: input, shape index: {}]   ;;  %s736_s1 = inlined_call_operand.vmem [shape: f32[32,384], index: 1, kind: input, shape index: {}]   ;;  %s737_s2 = inlined_call_operand.hbm [shape: f32[128,384], index: 2, kind: output, shape index: {}]  }
   0x1   :  { %v38_v0 = vld [vmem:[%s736_s1 + $0x50] sm:$0xff]  ;;  %v37_v1 = vld [vmem:[%s736_s1 + $0x48] sm:$0xff]  ;;  %v35_v2 = vld [vmem:[%s736_s1 + $0x38] sm:$0xff]  ;;  %153 = vmatprep.mubr.f32.mxu0 %v577_v11  ;;  %225 = vmatprep.mubr.f32.mxu1 %v577_v11 }
   0x2   :  { %113 = vmatprep.subr.mxu0 %v38_v0  ;;  %543 = vmatprep.subr.mxu1 %v38_v0  ;;  %v34_v3 = vld [vmem:[%s736_s1 + $0x30] sm:$0xff]  ;;  %v32_v4 = vld [vmem:[%s736_s1 + $0x20] sm:$0xff]  ;;  %v31_v5 = vld [vmem:[%s736_s1 + $0x18] sm:$0xff] }
   0x3   :  { %114 = vmatpush1.msra.mxu0 %v37_v1  ;;  %547 = vmatpush1.msra.mxu1 %v37_v1  ;;  %v29_v6 = vld [vmem:[%s736_s1 + $0x8] sm:$0xff]  ;;  %v28_v7 = vld [vmem:[%s736_s1] sm:$0xff]  ;;  %v39_v10 = vld [vmem:[%s736_s1 + $0x58] sm:$0xff] }
   0x4   :  { %115 = vmatprep.subr.mxu0 %v35_v2  ;;  %544 = vmatprep.subr.mxu1 %v35_v2  ;;  %v12_v8 = vld [vmem:[%s735_s0] sm:$0xff] }
   0x5   :  { %116 = vmatpush1.msra.mxu0 %v34_v3  ;;  %548 = vmatpush1.msra.mxu1 %v34_v3  ;;  %v626_v9 = vld [vmem:[%s735_s0 + $0x60] sm:$0xff] }
   0x6   :  { %117 = vmatprep.subr.mxu0 %v32_v4  ;;  %545 = vmatprep.subr.mxu1 %v32_v4 }
   0x7   :  { %118 = vmatpush1.msra.mxu0 %v31_v5  ;;  %549 = vmatpush1.msra.mxu1 %v31_v5 }
   0x8   :  { %119 = vmatprep.subr.mxu0 %v29_v6  ;;  %546 = vmatprep.subr.mxu1 %v29_v6 }
   0x9   :  { %120 = vmatpush1.msra.mxu0 %v28_v7  ;;  %550 = vmatpush1.msra.mxu1 %v28_v7 }
   0xa   :  { %7 = vsyncpa [#allocation3], 0  ;;  %459 = vmatmul.mubr.msk.f32.vlgmr.msra.gmra.mxu0 %vm40_vm0, %v12_v8  ;;  %471 = vmatmul.mubr.msk.f32.vlgmr.msra.gmra.mxu1 %vm40_vm0, %v626_v9  ;;  %v36_v12 = vld [vmem:[%s736_s1 + $0x40] sm:$0xff]  ;;  %v13_v13 = vld [vmem:[%s735_s0 + $0x8] sm:$0xff] }
   0xb   :  { %511 = vmatprep.subr.mxu1 %v39_v10  ;;  %159 = vmatprep.mubr.f32.mxu0 %v577_v11  ;;  %v25_v14 = vld [vmem:[%s735_s0 + $0x68] sm:$0xff]  ;;  %v14_v16 = vld [vmem:[%s735_s0 + $0x10] sm:$0xff]  ;;  %v15_v19 = vld [vmem:[%s735_s0 + $0x18] sm:$0xff] }
   0xc   :  { %512 = vmatpush3.msra.mxu1 %v39_v10  ;;  %231 = vmatprep.mubr.f32.mxu1 %v577_v11  ;;  %v33_v15 = vld [vmem:[%s736_s1 + $0x28] sm:$0xff]  ;;  %v26_v17 = vld [vmem:[%s735_s0 + $0x70] sm:$0xff]  ;;  %v27_v20 = vld [vmem:[%s735_s0 + $0x78] sm:$0xff] }
   0xd   :  { %513 = vmatprep.subr.mxu1 %v36_v12  ;;  %v30_v18 = vld [vmem:[%s736_s1 + $0x10] sm:$0xff]  ;;  %v16_v21 = vld [vmem:[%s735_s0 + $0x20] sm:$0xff]  ;;  %v17_v22 = vld [vmem:[%s735_s0 + $0x28] sm:$0xff] }
   0xe   :  { %460 = vmatmul.mubr.msk.f32.gmra.mxu0 %vm40_vm0, %v13_v13  ;;  %472 = vmatmul.mubr.msk.f32.gmra.mxu1 %vm40_vm0, %v25_v14  ;;  %v18_v23 = vld [vmem:[%s735_s0 + $0x30] sm:$0xff]  ;;  %v19_v24 = vld [vmem:[%s735_s0 + $0x38] sm:$0xff]  ;;  %v20_v25 = vld [vmem:[%s735_s0 + $0x40] sm:$0xff] }
   0xf   :  { %514 = vmatpush3.msra.mxu1 %v36_v12  ;;  %165 = vmatprep.mubr.f32.mxu0 %v577_v11  ;;  %v21_v26 = vld [vmem:[%s735_s0 + $0x48] sm:$0xff]  ;;  %v22_v27 = vld [vmem:[%s735_s0 + $0x50] sm:$0xff]  ;;  %v23_v28 = vld [vmem:[%s735_s0 + $0x58] sm:$0xff]  ;;  %s578_s0 = smov [#allocation2]  }
  0x10   :  { %237 = vmatprep.mubr.f32.mxu1 %v577_v11  ;;  %515 = vmatprep.subr.mxu1 %v33_v15  ;;  %s448_s8 = sshll.u32 %s578_s0, 4  ;;  %s449_s8 = int_to_ptr.vmem [resolvable:$true] %s448_s8 }
  0x11   :  { %516 = vmatpush3.msra.mxu1 %v33_v15  ;;  %s555_s9 = scalar_lea.vmem %s449_s8, 6144  ;;  %p560_p1 = scmp.lt.s32.totalorder %s449_s8, %s449_s8 }
  0x12   :  { %461 = vmatmul.mubr.msk.f32.gmra.mxu0 %vm40_vm0, %v14_v16  ;;  %473 = vmatmul.mubr.msk.f32.gmra.mxu1 %vm40_vm0, %v26_v17  ;;  %p556_p0 = scmp.ne.s32.totalorder %s449_s8, %s555_s9  ;;  %p561_p2 = scmp.lt.s32.totalorder %s555_s9, %s555_s9 }
  0x13   :  { %171 = vmatprep.mubr.f32.mxu0 %v577_v11  ;;  %243 = vmatprep.mubr.f32.mxu1 %v577_v11 }
  0x14   :  { %517 = vmatprep.subr.mxu1 %v30_v18  ;;  %p562_p3 = por %p561_p2, %p560_p1 }
  0x15   :  { %518 = vmatpush3.msra.mxu1 %v30_v18 }
  0x16   :  { %462 = vmatmul.mubr.msk.f32.gmra.mxu0 %vm40_vm0, %v15_v19  ;;  %474 = vmatmul.mubr.msk.f32.gmra.mxu1 %vm40_vm0, %v27_v20  ;;  %p563_p4 = pnand %p562_p3, %p556_p0 }
  0x17   :  { %177 = vmatprep.mubr.f32.mxu0 %v577_v11  ;;  %519 = vmatprep.mubr.msk.f32.mxu1 %vm40_vm0, %v12_v8 }
  0x1a   :  { %463 = vmatmul.mubr.msk.f32.gmra.mxu0 %vm40_vm0, %v16_v21  ;;  %520 = vmatmul.mubr.msk.f32.vlgmr.msra.gmra.mxu1 %vm40_vm0, %v13_v13 }
  0x1b   :  { %183 = vmatprep.mubr.f32.mxu0 %v577_v11  ;;  %522 = vmatprep.mubr.msk.f32.mxu1 %vm40_vm0, %v14_v16 }
  0x1e   :  { %464 = vmatmul.mubr.msk.f32.gmra.mxu0 %vm40_vm0, %v17_v22  ;;  %523 = vmatmul.mubr.msk.f32.gmra.mxu1 %vm40_vm0, %v15_v19 }
  0x1f   :  { %189 = vmatprep.mubr.f32.mxu0 %v577_v11  ;;  %525 = vmatprep.mubr.msk.f32.mxu1 %vm40_vm0, %v16_v21 }
  0x22   :  { %465 = vmatmul.mubr.msk.f32.gmra.mxu0 %vm40_vm0, %v18_v23  ;;  %526 = vmatmul.mubr.msk.f32.gmra.mxu1 %vm40_vm0, %v17_v22 }
  0x23   :  { %195 = vmatprep.mubr.f32.mxu0 %v577_v11  ;;  %528 = vmatprep.mubr.msk.f32.mxu1 %vm40_vm0, %v18_v23 }
  0x26   :  { %466 = vmatmul.mubr.msk.f32.gmra.mxu0 %vm40_vm0, %v19_v24  ;;  %529 = vmatmul.mubr.msk.f32.gmra.mxu1 %vm40_vm0, %v19_v24 }
  0x27   :  { %201 = vmatprep.mubr.f32.mxu0 %v577_v11  ;;  %531 = vmatprep.mubr.msk.f32.mxu1 %vm40_vm0, %v20_v25 }
  0x2a   :  { %467 = vmatmul.mubr.msk.f32.gmra.mxu0 %vm40_vm0, %v20_v25  ;;  %532 = vmatmul.mubr.msk.f32.gmra.mxu1 %vm40_vm0, %v21_v26 }
  0x2b   :  { %207 = vmatprep.mubr.f32.mxu0 %v577_v11  ;;  %534 = vmatprep.mubr.msk.f32.mxu1 %vm40_vm0, %v22_v27 }
  0x2e   :  { %468 = vmatmul.mubr.msk.f32.gmra.mxu0 %vm40_vm0, %v21_v26  ;;  %535 = vmatmul.mubr.msk.f32.gmra.mxu1 %vm40_vm0, %v23_v28 }
  0x2f   :  { %213 = vmatprep.mubr.f32.mxu0 %v577_v11  ;;  %537 = vmatprep.mubr.msk.f32.mxu1 %vm40_vm0, %v626_v9 }
  0x32   :  { %469 = vmatmul.mubr.msk.f32.gmra.mxu0 %vm40_vm0, %v22_v27  ;;  %538 = vmatmul.mubr.msk.f32.gmra.mxu1 %vm40_vm0, %v25_v14 }
  0x33   :  { %219 = vmatprep.mubr.f32.mxu0 %v577_v11  ;;  %540 = vmatprep.mubr.msk.f32.mxu1 %vm40_vm0, %v26_v17 }
  0x36   :  { %470 = vmatmul.mubr.msk.f32.gmra.mxu0 %vm40_vm0, %v23_v28  ;;  %541 = vmatmul.mubr.msk.f32.gmra.mxu1 %vm40_vm0, %v27_v20 }
  0xca   :  { %v155_v29 = vpop.f32.mrf.mxu0  ;;  %v227_v30 = vpop.f32.mrf.mxu1 }
  0xcb   :  { %395 = vst [vmem:[#allocation2] sm:$0xff] %v155_v29  ;;  %431 = vst [vmem:[#allocation2 + $0x120] sm:$0xff] %v227_v30 }
  0xcc   :  { %v157_v31 = vpop.f32.mrf.mxu0  ;;  %v229_v32 = vpop.f32.mrf.mxu1 }
  0xcd   :  { %396 = vst [vmem:[#allocation2 + $0x8] sm:$0xff] %v157_v31  ;;  %432 = vst [vmem:[#allocation2 + $0x128] sm:$0xff] %v229_v32 }
  0xce   :  { %v161_v33 = vpop.f32.mrf.mxu0  ;;  %v233_v34 = vpop.f32.mrf.mxu1 }
  0xcf   :  { %398 = vst [vmem:[#allocation2 + $0x18] sm:$0xff] %v161_v33  ;;  %434 = vst [vmem:[#allocation2 + $0x138] sm:$0xff] %v233_v34 }
  0xd0   :  { %v163_v35 = vpop.f32.mrf.mxu0  ;;  %v235_v36 = vpop.f32.mrf.mxu1 }
  0xd1   :  { %399 = vst [vmem:[#allocation2 + $0x20] sm:$0xff] %v163_v35  ;;  %435 = vst [vmem:[#allocation2 + $0x140] sm:$0xff] %v235_v36 }
  0xd2   :  { %v167_v37 = vpop.f32.mrf.mxu0  ;;  %v239_v38 = vpop.f32.mrf.mxu1 }
  0xd3   :  { %401 = vst [vmem:[#allocation2 + $0x30] sm:$0xff] %v167_v37  ;;  %437 = vst [vmem:[#allocation2 + $0x150] sm:$0xff] %v239_v38 }
  0xd4   :  { %v169_v39 = vpop.f32.mrf.mxu0  ;;  %v241_v40 = vpop.f32.mrf.mxu1 }
  0xd5   :  { %402 = vst [vmem:[#allocation2 + $0x38] sm:$0xff] %v169_v39  ;;  %438 = vst [vmem:[#allocation2 + $0x158] sm:$0xff] %v241_v40 }
  0xd6   :  { %v173_v41 = vpop.f32.mrf.mxu0  ;;  %v245_v42 = vpop.f32.mrf.mxu1 }
  0xd7   :  { %404 = vst [vmem:[#allocation2 + $0x48] sm:$0xff] %v173_v41  ;;  %440 = vst [vmem:[#allocation2 + $0x168] sm:$0xff] %v245_v42 }
  0xd8   :  { %v175_v43 = vpop.f32.mrf.mxu0  ;;  %v247_v44 = vpop.f32.mrf.mxu1 }
  0xd9   :  { %405 = vst [vmem:[#allocation2 + $0x50] sm:$0xff] %v175_v43  ;;  %441 = vst [vmem:[#allocation2 + $0x170] sm:$0xff] %v247_v44 }
  0xda   :  { %v179_v45 = vpop.f32.mrf.mxu0  ;;  %v521_v46 = vpop.f32.mrf.mxu1 }
  0xdb   :  { %407 = vst [vmem:[#allocation2 + $0x60] sm:$0xff] %v179_v45  ;;  %400 = vst [vmem:[#allocation2 + $0x28] sm:$0xff] %v521_v46 }
  0xdc   :  { %v181_v47 = vpop.f32.mrf.mxu0  ;;  %v316_v48 = vpop.f32.mrf.mxu1 }
  0xdd   :  { %408 = vst [vmem:[#allocation2 + $0x68] sm:$0xff] %v181_v47  ;;  %397 = vst [vmem:[#allocation2 + $0x10] sm:$0xff] %v316_v48 }
  0xde   :  { %v185_v49 = vpop.f32.mrf.mxu0  ;;  %v524_v50 = vpop.f32.mrf.mxu1 }
  0xdf   :  { %410 = vst [vmem:[#allocation2 + $0x78] sm:$0xff] %v185_v49  ;;  %406 = vst [vmem:[#allocation2 + $0x58] sm:$0xff] %v524_v50 }
  0xe0   :  { %v187_v51 = vpop.f32.mrf.mxu0  ;;  %v326_v52 = vpop.f32.mrf.mxu1 }
  0xe1   :  { %411 = vst [vmem:[#allocation2 + $0x80] sm:$0xff] %v187_v51  ;;  %403 = vst [vmem:[#allocation2 + $0x40] sm:$0xff] %v326_v52 }
  0xe2   :  { %v191_v53 = vpop.f32.mrf.mxu0  ;;  %v527_v54 = vpop.f32.mrf.mxu1 }
  0xe3   :  { %413 = vst [vmem:[#allocation2 + $0x90] sm:$0xff] %v191_v53  ;;  %412 = vst [vmem:[#allocation2 + $0x88] sm:$0xff] %v527_v54 }
  0xe4   :  { %v193_v55 = vpop.f32.mrf.mxu0  ;;  %v336_v56 = vpop.f32.mrf.mxu1 }
  0xe5   :  { %414 = vst [vmem:[#allocation2 + $0x98] sm:$0xff] %v193_v55  ;;  %409 = vst [vmem:[#allocation2 + $0x70] sm:$0xff] %v336_v56 }
  0xe6   :  { %v197_v57 = vpop.f32.mrf.mxu0  ;;  %v530_v58 = vpop.f32.mrf.mxu1 }
  0xe7   :  { %416 = vst [vmem:[#allocation2 + $0xa8] sm:$0xff] %v197_v57  ;;  %418 = vst [vmem:[#allocation2 + $0xb8] sm:$0xff] %v530_v58 }
  0xe8   :  { %v199_v59 = vpop.f32.mrf.mxu0  ;;  %v346_v60 = vpop.f32.mrf.mxu1 }
  0xe9   :  { %417 = vst [vmem:[#allocation2 + $0xb0] sm:$0xff] %v199_v59  ;;  %415 = vst [vmem:[#allocation2 + $0xa0] sm:$0xff] %v346_v60 }
  0xea   :  { %v203_v61 = vpop.f32.mrf.mxu0  ;;  %v533_v62 = vpop.f32.mrf.mxu1 }
  0xeb   :  { %419 = vst [vmem:[#allocation2 + $0xc0] sm:$0xff] %v203_v61  ;;  %424 = vst [vmem:[#allocation2 + $0xe8] sm:$0xff] %v533_v62 }
  0xec   :  { %v205_v63 = vpop.f32.mrf.mxu0  ;;  %v356_v0 = vpop.f32.mrf.mxu1 }
  0xed   :  { %420 = vst [vmem:[#allocation2 + $0xc8] sm:$0xff] %v205_v63  ;;  %421 = vst [vmem:[#allocation2 + $0xd0] sm:$0xff] %v356_v0 }
  0xee   :  { %v209_v1 = vpop.f32.mrf.mxu0  ;;  %v536_v2 = vpop.f32.mrf.mxu1 }
  0xef   :  { %422 = vst [vmem:[#allocation2 + $0xd8] sm:$0xff] %v209_v1  ;;  %430 = vst [vmem:[#allocation2 + $0x118] sm:$0xff] %v536_v2 }
  0xf0   :  { %v211_v3 = vpop.f32.mrf.mxu0  ;;  %v366_v4 = vpop.f32.mrf.mxu1 }
  0xf1   :  { %423 = vst [vmem:[#allocation2 + $0xe0] sm:$0xff] %v211_v3  ;;  %427 = vst [vmem:[#allocation2 + $0x100] sm:$0xff] %v366_v4 }
  0xf2   :  { %v215_v5 = vpop.f32.mrf.mxu0  ;;  %v539_v6 = vpop.f32.mrf.mxu1 }
  0xf3   :  { %425 = vst [vmem:[#allocation2 + $0xf0] sm:$0xff] %v215_v5  ;;  %436 = vst [vmem:[#allocation2 + $0x148] sm:$0xff] %v539_v6 }
  0xf4   :  { %v217_v7 = vpop.f32.mrf.mxu0  ;;  %v376_v8 = vpop.f32.mrf.mxu1 }
  0xf5   :  { %426 = vst [vmem:[#allocation2 + $0xf8] sm:$0xff] %v217_v7  ;;  %433 = vst [vmem:[#allocation2 + $0x130] sm:$0xff] %v376_v8 }
  0xf6   :  { %v221_v9 = vpop.f32.mrf.mxu0  ;;  %v542_v10 = vpop.f32.mrf.mxu1 }
  0xf7   :  { %428 = vst [vmem:[#allocation2 + $0x108] sm:$0xff] %v221_v9  ;;  %442 = vst [vmem:[#allocation2 + $0x178] sm:$0xff] %v542_v10 }
  0xf8   :  { %v223_v11 = vpop.f32.mrf.mxu0  ;;  %v386_v12 = vpop.f32.mrf.mxu1 }
  0xf9   :  { %429 = vst [vmem:[#allocation2 + $0x110] sm:$0xff] %v223_v11  ;;  %439 = vst [vmem:[#allocation2 + $0x160] sm:$0xff] %v386_v12 }
  0xfa   :  { %566 = shalt.err (!%p563_p4)
}
  0xfb   :  { %s579_s10 = smov 384   ;;  %s580_s11 = smov 24  }
  0xfc   :  { %454 = dma.vmem_to_hbm [thread:$0]  %s449_s8, 6144, %s737_s2, [#allocation3], %s579_s10, %s579_s10, %s580_s11  }
  0xfd   :  { %575 = dma.done.wait [#allocation3], 6144  }
  0xfe   :  { %576 = vsyncadd [#allocation3], 4294961152 }
  0xff   :  { %458 = vsyncpa [#allocation3], 1 }

</bundles_post_ra>
